<compile_context>
chip_gen: v7x
topology: tpu7x:2x2x1
jax: 0.10.0
libtpu: 0.0.40
codegen_flags: <defaults>
</compile_context>

<pallas_src>
import jax
import jax.numpy as jnp
from jax.experimental import pallas as pl
from jax.experimental.pallas import tpu as pltpu

_BN_EPS = 1e-5
_NEG_BIG = -3.0e38


# ----------------------------- element-wise helpers -----------------------------
def _sigmoid(z):
    # divide goes to the otherwise-idle EUP (exp is already there)
    return pl.reciprocal(1.0 + jnp.exp(-z), approx=True)


def _silu(z):
    return z * _sigmoid(z)


def _softmax_ch(z):
    # softmax over the channel (sublane) axis of a (C, 1) column
    z = z - jnp.max(z, axis=0, keepdims=True)
    e = jnp.exp(z)
    return e * pl.reciprocal(jnp.sum(e, axis=0, keepdims=True), approx=True)


# --------------------------------- kernels ---------------------------------------
def _make_whole_kernel(c, cp, hw):
    """One whole image per grid step (fits in VMEM)."""
    inv_hw = 1.0 / float(hw)

    def kernel(sc_ref, x_ref, ws_ref, bias_ref, mw_ref, o_ref):
        # sc_ref (SMEM f32[3]): [m2_bias, m2_w_avg, m2_w_max]
        # x_ref : (C, HW)      ws_ref : (CP, C) bf16 (rows 0..C-1 = v conv, row C = k)
        # bias_ref: (CP, 1)    mw_ref : (C, C) f32 (m conv, no BN)
        x_raw = x_ref[...]
        x = x_raw.astype(jnp.float32)                            # (C, HW)

        # adaptive avg / max pool over spatial, softmax over channels
        avg_s = _softmax_ch(jnp.sum(x, axis=1, keepdims=True) * inv_hw)   # (C,1)
        max_s = _softmax_ch(jnp.max(x, axis=1, keepdims=True))            # (C,1)

        # fused v + k 1x1 convs: single bf16 MXU pass over x (f32 accumulate)
        lin = jnp.dot(ws_ref[...], x_raw.astype(jnp.bfloat16),
                      preferred_element_type=jnp.float32) + bias_ref[...]  # (CP, HW)
        v = _silu(lin[0:c])                                      # (C, HW)
        k_act = _silu(lin[c:c + 1])                              # (1, HW)

        # k softmax over spatial
        k_act = k_act - jnp.max(k_act, axis=1, keepdims=True)
        k_e = jnp.exp(k_act)
        k_soft = k_e * pl.reciprocal(jnp.sum(k_e, axis=1, keepdims=True), approx=True)

        # m branch: m_w @ (v @ softmax(k))  (cheap associativity, (C,1) matvec)
        vk = jnp.sum(v * k_soft, axis=1, keepdims=True)          # (C,1) lane reduce
        m_y = _silu(jnp.dot(mw_ref[...], vk, preferred_element_type=jnp.float32))

        # m2 gate: 2->1 conv folded into channel-attention weights
        gate_w = sc_ref[1] * avg_s + sc_ref[2] * max_s           # (C,1)
        m2_lin = jnp.sum(v * gate_w, axis=0, keepdims=True) + sc_ref[0]   # (1,HW)
        gate = _sigmoid(_silu(m2_lin))

        o_ref[...] = (x + m_y * gate).astype(o_ref.dtype)

    return kernel


def _make_stats_kernel(c, cp, hw, hw_tile, n_tiles):
    """Tiled pass 1: online-softmax sweep over HW tiles -> per-image (C,2) stats."""
    inv_hw = 1.0 / float(hw)
    need_mask = (hw % hw_tile) != 0

    def kernel(sc_ref, x_ref, ws_ref, bias_ref, mw_ref, st_ref,
               sum_x, max_x, km, kl, vk_acc):
        t = pl.program_id(1)

        @pl.when(t == 0)
        def _():
            sum_x[...] = jnp.zeros_like(sum_x)
            max_x[...] = jnp.full_like(max_x, _NEG_BIG)
            km[...] = jnp.full_like(km, _NEG_BIG)
            kl[...] = jnp.zeros_like(kl)
            vk_acc[...] = jnp.zeros_like(vk_acc)

        x = x_ref[...].astype(jnp.float32)                       # (C, HWt)
        if need_mask:
            lane = jax.lax.broadcasted_iota(jnp.int32, (1, hw_tile), 1)
            valid = (t * hw_tile + lane) < hw                    # (1, HWt)
            x_in = jnp.where(valid, x, 0.0)                      # safe for sum / matmul
            x_mx = jnp.where(valid, x, _NEG_BIG)
        else:
            x_in = x
            x_mx = x

        sum_x[...] += jnp.sum(x_in, axis=1, keepdims=True)
        max_x[...] = jnp.maximum(max_x[...], jnp.max(x_mx, axis=1, keepdims=True))

        lin = jnp.dot(ws_ref[...], x_in.astype(jnp.bfloat16),
                      preferred_element_type=jnp.float32) + bias_ref[...]  # (CP, HWt)
        v = _silu(lin[0:c])                                      # (C, HWt)
        k_act = _silu(lin[c:c + 1])                              # (1, HWt)
        if need_mask:
            k_act = jnp.where(valid, k_act, _NEG_BIG)            # exp -> 0 on padding

        # online softmax accumulation for the k branch
        m_new = jnp.maximum(km[...], jnp.max(k_act, axis=1, keepdims=True))  # (1,1)
        alpha = jnp.exp(km[...] - m_new)                                     # (1,1)
        p = jnp.exp(k_act - m_new)                                           # (1,HWt)
        kl[...] = alpha * kl[...] + jnp.sum(p, axis=1, keepdims=True)
        vk_acc[...] = alpha * vk_acc[...] + jnp.sum(v * p, axis=1, keepdims=True)
        km[...] = m_new

        @pl.when(t == n_tiles - 1)
        def _():
            avg_s = _softmax_ch(sum_x[...] * inv_hw)             # (C,1)
            max_s = _softmax_ch(max_x[...])                      # (C,1)
            gate_w = sc_ref[1] * avg_s + sc_ref[2] * max_s       # (C,1)

            vk = vk_acc[...] * pl.reciprocal(kl[...], approx=True)
            m_y = _silu(jnp.dot(mw_ref[...], vk, preferred_element_type=jnp.float32))

            st_ref[:, 0:1] = m_y
            st_ref[:, 1:2] = gate_w

    return kernel


def _make_apply_kernel(c, cp):
    """Tiled pass 2: recompute v per tile, apply gate, write x + m_y * gate."""

    def kernel(sc_ref, x_ref, st_ref, ws_ref, bias_ref, o_ref):
        x_raw = x_ref[...]
        x = x_raw.astype(jnp.float32)                            # (C, HWt)
        lin = jnp.dot(ws_ref[...], x_raw.astype(jnp.bfloat16),
                      preferred_element_type=jnp.float32) + bias_ref[...]
        v = _silu(lin[0:c])                                      # (C, HWt)

        m_y = st_ref[:, 0:1]                                     # (C,1)
        gate_w = st_ref[:, 1:2]                                  # (C,1)

        m2_lin = jnp.sum(v * gate_w, axis=0, keepdims=True) + sc_ref[0]    # (1,HWt)
        gate = _sigmoid(_silu(m2_lin))

        # out-of-range lanes of the last tile are discarded on writeback
        o_ref[...] = (x + m_y * gate).astype(o_ref.dtype)

    return kernel


# --------------------------------- host wrapper -----------------------------------
def _fold_bn(w2d, gamma, beta, mean, var):
    scale = gamma / jnp.sqrt(var + _BN_EPS)
    return w2d * scale[:, None], beta - mean * scale


def _vmem_limit_bytes():
    try:
        cap = int(pltpu.get_tpu_info().vmem_capacity_bytes)
    except Exception:
        cap = 128 * 1024 * 1024
    # keep compiler-scratch / double-buffering headroom; never ask for all of VMEM
    return max(32 * 1024 * 1024, min(cap - 16 * 1024 * 1024, 112 * 1024 * 1024))


def scam_forward(x_nchw, params, *, io_dtype=jnp.float32, force_hw_tile=None):
    n, c, h, w = x_nchw.shape
    hw = h * w
    cp = ((c + 1 + 7) // 8) * 8          # rows 0..c-1: v conv, row c: k conv, rest pad

    x = x_nchw.reshape(n, c, hw).astype(io_dtype)

    kw_eff, kb = _fold_bn(params["k_w"], params["k_gamma"], params["k_beta"],
                          params["k_mean"], params["k_var"])          # (1,C), (1,)
    vw_eff, vb = _fold_bn(params["v_w"], params["v_gamma"], params["v_beta"],
                          params["v_mean"], params["v_var"])          # (C,C), (C,)
    m2w_eff, m2b = _fold_bn(params["m2_w"], params["m2_gamma"], params["m2_beta"],
                            params["m2_mean"], params["m2_var"])      # (1,2), (1,)
    mw = params["m_w"].astype(jnp.float32)                            # (C,C), no BN

    # Stacked 1x1 conv weights: v first (sublane-aligned at 0), k as the last live row.
    w_stack = jnp.zeros((cp, c), jnp.float32)
    w_stack = w_stack.at[0:c, :].set(vw_eff)
    w_stack = w_stack.at[c, :].set(kw_eff[0])
    w_stack_bf16 = w_stack.astype(jnp.bfloat16)

    b_stack = jnp.zeros((cp, 1), jnp.float32)
    b_stack = b_stack.at[0:c, 0].set(vb)
    b_stack = b_stack.at[c, 0].set(kb[0])

    sc = jnp.stack([m2b[0], m2w_eff[0, 0], m2w_eff[0, 1]]).astype(jnp.float32)

    vmem_limit = _vmem_limit_bytes()
    io_bytes = jnp.dtype(io_dtype).itemsize

    def footprint(lanes):
        # 2x double-buffered input + 2x output blocks + f32 temps (lin, v, elementwise)
        return 4 * c * lanes * io_bytes + (cp + 3 * c) * lanes * 4

    use_whole = force_hw_tile is None and footprint(hw) <= vmem_limit // 2

    if use_whole:
        out = pl.pallas_call(
            _make_whole_kernel(c, cp, hw),
            out_shape=jax.ShapeDtypeStruct((n, c, hw), io_dtype),
            grid_spec=pltpu.PrefetchScalarGridSpec(
                num_scalar_prefetch=0,
                grid=(n,),
                in_specs=[
                    pl.BlockSpec(memory_space=pltpu.MemorySpace.SMEM),     # scalars
                    pl.BlockSpec((None, c, hw), lambda b: (b, 0, 0)),      # x
                    pl.BlockSpec((cp, c), lambda b: (0, 0)),               # stacked w
                    pl.BlockSpec((cp, 1), lambda b: (0, 0)),               # stacked b
                    pl.BlockSpec((c, c), lambda b: (0, 0)),                # m conv w
                ],
                out_specs=pl.BlockSpec((None, c, hw), lambda b: (b, 0, 0)),
            ),
            compiler_params=pltpu.CompilerParams(
                dimension_semantics=("parallel",),
                vmem_limit_bytes=int(vmem_limit),
            ),
        )(sc, x, w_stack_bf16, b_stack, mw)
        return out.reshape(n, c, h, w)

    # ---------------- tiled two-pass path (large C*HW or forced) ----------------
    if force_hw_tile is not None:
        assert force_hw_tile % 128 == 0, "hw tile must be a multiple of 128 lanes"
        hw_tile = force_hw_tile
    else:
        hw_tile = 128
        for cand in (8192, 4096, 2048, 1024, 512, 256, 128):
            if footprint(cand) <= vmem_limit // 2:
                hw_tile = cand
                break
    n_tiles = -(-hw // hw_tile)

    stats = pl.pallas_call(
        _make_stats_kernel(c, cp, hw, hw_tile, n_tiles),
        out_shape=jax.ShapeDtypeStruct((n, c, 2), jnp.float32),
        grid_spec=pltpu.PrefetchScalarGridSpec(
            num_scalar_prefetch=0,
            grid=(n, n_tiles),
            in_specs=[
                pl.BlockSpec(memory_space=pltpu.MemorySpace.SMEM),
                pl.BlockSpec((None, c, hw_tile), lambda b, t: (b, 0, t)),
                pl.BlockSpec((cp, c), lambda b, t: (0, 0)),
                pl.BlockSpec((cp, 1), lambda b, t: (0, 0)),
                pl.BlockSpec((c, c), lambda b, t: (0, 0)),
            ],
            out_specs=pl.BlockSpec((None, c, 2), lambda b, t: (b, 0, 0)),
            scratch_shapes=[
                pltpu.VMEM((c, 1), jnp.float32),   # running sum (avg pool)
                pltpu.VMEM((c, 1), jnp.float32),   # running max (max pool)
                pltpu.VMEM((1, 1), jnp.float32),   # k online-softmax max
                pltpu.VMEM((1, 1), jnp.float32),   # k online-softmax denom
                pltpu.VMEM((c, 1), jnp.float32),   # v @ exp(k - m) accumulator
            ],
        ),
        compiler_params=pltpu.CompilerParams(
            dimension_semantics=("parallel", "arbitrary"),
            vmem_limit_bytes=int(vmem_limit),
        ),
    )(sc, x, w_stack_bf16, b_stack, mw)

    out = pl.pallas_call(
        _make_apply_kernel(c, cp),
        out_shape=jax.ShapeDtypeStruct((n, c, hw), io_dtype),
        grid_spec=pltpu.PrefetchScalarGridSpec(
            num_scalar_prefetch=0,
            grid=(n, n_tiles),
            in_specs=[
                pl.BlockSpec(memory_space=pltpu.MemorySpace.SMEM),
                pl.BlockSpec((None, c, hw_tile), lambda b, t: (b, 0, t)),
                pl.BlockSpec((None, c, 2), lambda b, t: (b, 0, 0)),
                pl.BlockSpec((cp, c), lambda b, t: (0, 0)),
                pl.BlockSpec((cp, 1), lambda b, t: (0, 0)),
            ],
            out_specs=pl.BlockSpec((None, c, hw_tile), lambda b, t: (b, 0, t)),
        ),
        compiler_params=pltpu.CompilerParams(
            dimension_semantics=("parallel", "parallel"),
            vmem_limit_bytes=int(vmem_limit),
        ),
    )(sc, x, stats, w_stack_bf16, b_stack)

    return out.reshape(n, c, h, w)


# ---------------- pure-JAX reference (mirrors the PyTorch forward) ----------------
def scam_ref(x, params):
    n, c, h, w = x.shape

    def conv1x1(z, w2d):
        return jnp.einsum("oc,nchw->nohw", w2d, z)

    def bn(z, gamma, beta, mean, var):
        r = lambda t: t.reshape(1, -1, 1, 1)
        return r(gamma) * (z - r(mean)) / jnp.sqrt(r(var) + _BN_EPS) + r(beta)

    silu = lambda t: t * jax.nn.sigmoid(t)

    avg = jax.nn.softmax(jnp.mean(x, axis=(2, 3)), axis=1).reshape(n, 1, 1, c)
    mx = jax.nn.softmax(jnp.max(x, axis=(2, 3)), axis=1).reshape(n, 1, 1, c)
    k = silu(bn(conv1x1(x, params["k_w"]), params["k_gamma"], params["k_beta"],
                params["k_mean"], params["k_var"]))
    v = silu(bn(conv1x1(x, params["v_w"]), params["v_gamma"], params["v_beta"],
                params["v_mean"], params["v_var"]))
    kf = jax.nn.softmax(k.reshape(n, 1, -1, 1), axis=2)
    vf = v.reshape(n, 1, c, -1)
    y = jnp.matmul(vf, kf).reshape(n, c, 1, 1)
    y_avg = jnp.matmul(avg, vf).reshape(n, 1, h, w)
    y_max = jnp.matmul(mx, vf).reshape(n, 1, h, w)
    y_cat = jnp.concatenate([y_avg, y_max], axis=1)
    m_y = silu(conv1x1(y, params["m_w"]))
    m2 = silu(bn(conv1x1(y_cat, params["m2_w"]), params["m2_gamma"], params["m2_beta"],
                 params["m2_mean"], params["m2_var"]))
    return x + m_y * jax.nn.sigmoid(m2)


if __name__ == "__main__":
    c = 4
    key = jax.random.PRNGKey(0)
    ks = jax.random.split(key, 18)

    def bn_params(k0, k1, k2, k3, ch):
        return (1.0 + 0.1 * jax.random.normal(k0, (ch,), jnp.float32),   # gamma
                0.1 * jax.random.normal(k1, (ch,), jnp.float32),          # beta
                0.1 * jax.random.normal(k2, (ch,), jnp.float32),          # running_mean
                1.0 + 0.1 * jnp.abs(jax.random.normal(k3, (ch,), jnp.float32)))  # var

    kg, kb_, km_, kv_ = bn_params(ks[1], ks[2], ks[3], ks[4], 1)
    vg, vb_, vm_, vv_ = bn_params(ks[6], ks[7], ks[8], ks[9], c)
    m2g, m2b_, m2m_, m2v_ = bn_params(ks[12], ks[13], ks[14], ks[15], 1)

    params = {
        "k_w": 0.5 * jax.random.normal(ks[0], (1, c), jnp.float32),
        "k_gamma": kg, "k_beta": kb_, "k_mean": km_, "k_var": kv_,
        "v_w": 0.5 * jax.random.normal(ks[5], (c, c), jnp.float32),
        "v_gamma": vg, "v_beta": vb_, "v_mean": vm_, "v_var": vv_,
        "m_w": 0.5 * jax.random.normal(ks[10], (c, c), jnp.float32),
        "m2_w": 0.5 * jax.random.normal(ks[11], (1, 2), jnp.float32),
        "m2_gamma": m2g, "m2_beta": m2b_, "m2_mean": m2m_, "m2_var": m2v_,
    }

    tol = 5e-2   # covers bf16 MXU operands on the fused conv + approx EUP reciprocal

    # Case 1: 16x16 (256 lanes, aligned), whole-image path.
    x1 = jax.random.normal(ks[16], (2, c, 16, 16), jnp.float32)
    ref1 = scam_ref(x1, params)
    out1 = jax.block_until_ready(scam_forward(x1, params))
    assert out1.shape == x1.shape
    err1 = float(jnp.max(jnp.abs(out1 - ref1)))
    assert err1 < tol, f"whole-path max abs err {err1}"

    # Case 2: same input through the tiled two-pass (online-softmax) path, 2 HW tiles.
    out2 = jax.block_until_ready(scam_forward(x1, params, force_hw_tile=128))
    err2 = float(jnp.max(jnp.abs(out2 - ref1)))
    assert err2 < tol, f"tiled-path max abs err {err2}"

    # Case 3: 12x12 (144 lanes, NOT a multiple of 128) — no host pad/slice needed.
    x3 = jax.random.normal(ks[17], (2, c, 12, 12), jnp.float32)
    ref3 = scam_ref(x3, params)
    out3 = jax.block_until_ready(scam_forward(x3, params))
    err3 = float(jnp.max(jnp.abs(out3 - ref3)))
    assert err3 < tol, f"unaligned whole-path max abs err {err3}"

    # Case 4: unaligned spatial through the tiled path (exercises tail-tile masking).
    out4 = jax.block_until_ready(scam_forward(x3, params, force_hw_tile=128))
    err4 = float(jnp.max(jnp.abs(out4 - ref3)))
    assert err4 < tol, f"unaligned tiled-path max abs err {err4}"

    print("KERNEL_OK")
</pallas_src>

<mosaic_0001>
module attributes {stable_mosaic.version = 11 : i64} {
  func.func @kernel(%arg0: i32, %arg1: memref<3xf32, #tpu.memory_space<smem>>, %arg2: memref<1x4x256xf32, #tpu.memory_space<vmem>>, %arg3: memref<8x4xbf16, #tpu.memory_space<vmem>>, %arg4: memref<8x1xf32, #tpu.memory_space<vmem>>, %arg5: memref<4x4xf32, #tpu.memory_space<vmem>>, %arg6: memref<1x4x256xf32, #tpu.memory_space<vmem>>) attributes {dimension_semantics = [#tpu.dimension_semantics<parallel>], iteration_bounds = array<i64: 2>, scalar_prefetch = 0 : i64, scratch_operands = 0 : i64, tpu.core_type = #tpu.core_type<tc>, window_params = [{transform_indices = @transform_0, window_bounds = array<i64: 3>}, {transform_indices = @transform_1, window_bounds = array<i64: 1, 4, 256>}, {pipeline_mode = #tpu.pipeline_mode<synchronous>, transform_indices = @transform_2, window_bounds = array<i64: 8, 4>}, {pipeline_mode = #tpu.pipeline_mode<synchronous>, transform_indices = @transform_3, window_bounds = array<i64: 8, 1>}, {pipeline_mode = #tpu.pipeline_mode<synchronous>, transform_indices = @transform_4, window_bounds = array<i64: 4, 4>}, {transform_indices = @transform_5, window_bounds = array<i64: 1, 4, 256>}]} {
    %c0 = arith.constant 0 : index
    %c0_0 = arith.constant 0 : index
    %c0_1 = arith.constant 0 : index
    %0 = vector.load %arg2[%c0, %c0_0, %c0_1] : memref<1x4x256xf32, #tpu.memory_space<vmem>>, vector<1x4x256xf32>
    %1 = vector.shape_cast %0 : vector<1x4x256xf32> to vector<4x256xf32>
    %cst = arith.constant dense<0.000000e+00> : vector<4xf32>
    %2 = vector.multi_reduction <add>, %1, %cst [1] : vector<4x256xf32> to vector<4xf32>
    %3 = vector.shape_cast %2 : vector<4xf32> to vector<4x1xf32>
    %cst_2 = arith.constant 3.906250e-03 : f32
    %4 = vector.broadcast %cst_2 : f32 to vector<4x1xf32>
    %5 = arith.mulf %3, %4 : vector<4x1xf32>
    %cst_3 = arith.constant dense<0xFF800000> : vector<1xf32>
    %6 = vector.multi_reduction <maximumf>, %5, %cst_3 [0] : vector<4x1xf32> to vector<1xf32>
    %7 = vector.shape_cast %6 : vector<1xf32> to vector<1x1xf32>
    %8 = vector.broadcast %7 : vector<1x1xf32> to vector<4x1xf32>
    %9 = arith.subf %5, %8 : vector<4x1xf32>
    %10 = math.exp %9 : vector<4x1xf32>
    %cst_4 = arith.constant dense<0.000000e+00> : vector<1xf32>
    %11 = vector.multi_reduction <add>, %10, %cst_4 [0] : vector<4x1xf32> to vector<1xf32>
    %12 = vector.shape_cast %11 : vector<1xf32> to vector<1x1xf32>
    %13 = tpu.reciprocal %12 {approx = true} : vector<1x1xf32> -> vector<1x1xf32>
    %14 = vector.broadcast %13 : vector<1x1xf32> to vector<4x1xf32>
    %15 = arith.mulf %10, %14 : vector<4x1xf32>
    %cst_5 = arith.constant dense<0xFF800000> : vector<4xf32>
    %16 = vector.multi_reduction <maximumf>, %1, %cst_5 [1] : vector<4x256xf32> to vector<4xf32>
    %17 = vector.shape_cast %16 : vector<4xf32> to vector<4x1xf32>
    %cst_6 = arith.constant dense<0xFF800000> : vector<1xf32>
    %18 = vector.multi_reduction <maximumf>, %17, %cst_6 [0] : vector<4x1xf32> to vector<1xf32>
    %19 = vector.shape_cast %18 : vector<1xf32> to vector<1x1xf32>
    %20 = vector.broadcast %19 : vector<1x1xf32> to vector<4x1xf32>
    %21 = arith.subf %17, %20 : vector<4x1xf32>
    %22 = math.exp %21 : vector<4x1xf32>
    %cst_7 = arith.constant dense<0.000000e+00> : vector<1xf32>
    %23 = vector.multi_reduction <add>, %22, %cst_7 [0] : vector<4x1xf32> to vector<1xf32>
    %24 = vector.shape_cast %23 : vector<1xf32> to vector<1x1xf32>
    %25 = tpu.reciprocal %24 {approx = true} : vector<1x1xf32> -> vector<1x1xf32>
    %26 = vector.broadcast %25 : vector<1x1xf32> to vector<4x1xf32>
    %27 = arith.mulf %22, %26 : vector<4x1xf32>
    %c0_8 = arith.constant 0 : index
    %c0_9 = arith.constant 0 : index
    %28 = vector.load %arg3[%c0_8, %c0_9] : memref<8x4xbf16, #tpu.memory_space<vmem>>, vector<8x4xbf16>
    %29 = arith.truncf %1 : vector<4x256xf32> to vector<4x256xbf16>
    %cst_10 = arith.constant dense<0.000000e+00> : vector<8x256xf32>
    %30 = tpu.matmul %28, %29, %cst_10 {dimension_numbers = #tpu.dot_dimension_numbers<[1], [0], [0], [1], [0, 0, 1, 1], [], []>} : vector<8x4xbf16>, vector<4x256xbf16>, vector<8x256xf32> -> vector<8x256xf32>
    %c0_11 = arith.constant 0 : index
    %c0_12 = arith.constant 0 : index
    %31 = vector.load %arg4[%c0_11, %c0_12] : memref<8x1xf32, #tpu.memory_space<vmem>>, vector<8x1xf32>
    %32 = vector.broadcast %31 : vector<8x1xf32> to vector<8x256xf32>
    %33 = arith.addf %30, %32 : vector<8x256xf32>
    %34 = vector.extract_strided_slice %33 {offsets = [0, 0], sizes = [4, 256], strides = [1, 1]} : vector<8x256xf32> to vector<4x256xf32>
    %cst_13 = arith.constant 0.000000e+00 : f32
    %35 = vector.broadcast %cst_13 : f32 to vector<4x256xf32>
    %36 = arith.subf %35, %34 : vector<4x256xf32>
    %37 = math.exp %36 : vector<4x256xf32>
    %cst_14 = arith.constant 1.000000e+00 : f32
    %38 = vector.broadcast %cst_14 : f32 to vector<4x256xf32>
    %39 = arith.addf %38, %37 : vector<4x256xf32>
    %40 = tpu.reciprocal %39 {approx = true} : vector<4x256xf32> -> vector<4x256xf32>
    %41 = arith.mulf %34, %40 : vector<4x256xf32>
    %42 = vector.extract_strided_slice %33 {offsets = [4, 0], sizes = [1, 256], strides = [1, 1]} : vector<8x256xf32> to vector<1x256xf32>
    %cst_15 = arith.constant 0.000000e+00 : f32
    %43 = vector.broadcast %cst_15 : f32 to vector<1x256xf32>
    %44 = arith.subf %43, %42 : vector<1x256xf32>
    %45 = math.exp %44 : vector<1x256xf32>
    %cst_16 = arith.constant 1.000000e+00 : f32
    %46 = vector.broadcast %cst_16 : f32 to vector<1x256xf32>
    %47 = arith.addf %46, %45 : vector<1x256xf32>
    %48 = tpu.reciprocal %47 {approx = true} : vector<1x256xf32> -> vector<1x256xf32>
    %49 = arith.mulf %42, %48 : vector<1x256xf32>
    %cst_17 = arith.constant dense<0xFF800000> : vector<1xf32>
    %50 = vector.multi_reduction <maximumf>, %49, %cst_17 [1] : vector<1x256xf32> to vector<1xf32>
    %51 = vector.shape_cast %50 : vector<1xf32> to vector<1x1xf32>
    %52 = vector.broadcast %51 : vector<1x1xf32> to vector<1x256xf32>
    %53 = arith.subf %49, %52 : vector<1x256xf32>
    %54 = math.exp %53 : vector<1x256xf32>
    %cst_18 = arith.constant dense<0.000000e+00> : vector<1xf32>
    %55 = vector.multi_reduction <add>, %54, %cst_18 [1] : vector<1x256xf32> to vector<1xf32>
    %56 = vector.shape_cast %55 : vector<1xf32> to vector<1x1xf32>
    %57 = tpu.reciprocal %56 {approx = true} : vector<1x1xf32> -> vector<1x1xf32>
    %58 = vector.broadcast %57 : vector<1x1xf32> to vector<1x256xf32>
    %59 = arith.mulf %54, %58 : vector<1x256xf32>
    %60 = vector.broadcast %59 : vector<1x256xf32> to vector<4x256xf32>
    %61 = arith.mulf %41, %60 : vector<4x256xf32>
    %cst_19 = arith.constant dense<0.000000e+00> : vector<4xf32>
    %62 = vector.multi_reduction <add>, %61, %cst_19 [1] : vector<4x256xf32> to vector<4xf32>
    %63 = vector.shape_cast %62 : vector<4xf32> to vector<4x1xf32>
    %c0_20 = arith.constant 0 : index
    %c0_21 = arith.constant 0 : index
    %64 = vector.load %arg5[%c0_20, %c0_21] : memref<4x4xf32, #tpu.memory_space<vmem>>, vector<4x4xf32>
    %cst_22 = arith.constant dense<0.000000e+00> : vector<4x1xf32>
    %65 = tpu.matmul %64, %63, %cst_22 {dimension_numbers = #tpu.dot_dimension_numbers<[1], [0], [0], [1], [0, 0, 1, 1], [], []>} : vector<4x4xf32>, vector<4x1xf32>, vector<4x1xf32> -> vector<4x1xf32>
    %cst_23 = arith.constant 0.000000e+00 : f32
    %66 = vector.broadcast %cst_23 : f32 to vector<4x1xf32>
    %67 = arith.subf %66, %65 : vector<4x1xf32>
    %68 = math.exp %67 : vector<4x1xf32>
    %cst_24 = arith.constant 1.000000e+00 : f32
    %69 = vector.broadcast %cst_24 : f32 to vector<4x1xf32>
    %70 = arith.addf %69, %68 : vector<4x1xf32>
    %71 = tpu.reciprocal %70 {approx = true} : vector<4x1xf32> -> vector<4x1xf32>
    %72 = arith.mulf %65, %71 : vector<4x1xf32>
    %c1 = arith.constant 1 : index
    %73 = memref.load %arg1[%c1] : memref<3xf32, #tpu.memory_space<smem>>
    %74 = vector.broadcast %73 : f32 to vector<4x1xf32>
    %75 = arith.mulf %74, %15 : vector<4x1xf32>
    %c2 = arith.constant 2 : index
    %76 = memref.load %arg1[%c2] : memref<3xf32, #tpu.memory_space<smem>>
    %77 = vector.broadcast %76 : f32 to vector<4x1xf32>
    %78 = arith.mulf %77, %27 : vector<4x1xf32>
    %79 = arith.addf %75, %78 : vector<4x1xf32>
    %80 = vector.broadcast %79 : vector<4x1xf32> to vector<4x256xf32>
    %81 = arith.mulf %41, %80 : vector<4x256xf32>
    %cst_25 = arith.constant dense<0.000000e+00> : vector<256xf32>
    %82 = vector.multi_reduction <add>, %81, %cst_25 [0] : vector<4x256xf32> to vector<256xf32>
    %83 = vector.shape_cast %82 : vector<256xf32> to vector<1x256xf32>
    %c0_26 = arith.constant 0 : index
    %84 = memref.load %arg1[%c0_26] : memref<3xf32, #tpu.memory_space<smem>>
    %85 = vector.broadcast %84 : f32 to vector<1x256xf32>
    %86 = arith.addf %83, %85 : vector<1x256xf32>
    %cst_27 = arith.constant 0.000000e+00 : f32
    %87 = vector.broadcast %cst_27 : f32 to vector<1x256xf32>
    %88 = arith.subf %87, %86 : vector<1x256xf32>
    %89 = math.exp %88 : vector<1x256xf32>
    %cst_28 = arith.constant 1.000000e+00 : f32
    %90 = vector.broadcast %cst_28 : f32 to vector<1x256xf32>
    %91 = arith.addf %90, %89 : vector<1x256xf32>
    %92 = tpu.reciprocal %91 {approx = true} : vector<1x256xf32> -> vector<1x256xf32>
    %93 = arith.mulf %86, %92 : vector<1x256xf32>
    %cst_29 = arith.constant 0.000000e+00 : f32
    %94 = vector.broadcast %cst_29 : f32 to vector<1x256xf32>
    %95 = arith.subf %94, %93 : vector<1x256xf32>
    %96 = math.exp %95 : vector<1x256xf32>
    %cst_30 = arith.constant 1.000000e+00 : f32
    %97 = vector.broadcast %cst_30 : f32 to vector<1x256xf32>
    %98 = arith.addf %97, %96 : vector<1x256xf32>
    %99 = tpu.reciprocal %98 {approx = true} : vector<1x256xf32> -> vector<1x256xf32>
    %100 = vector.broadcast %72 : vector<4x1xf32> to vector<4x256xf32>
    %101 = vector.broadcast %99 : vector<1x256xf32> to vector<4x256xf32>
    %102 = arith.mulf %100, %101 : vector<4x256xf32>
    %103 = arith.addf %1, %102 : vector<4x256xf32>
    %c0_31 = arith.constant 0 : index
    %c0_32 = arith.constant 0 : index
    %c0_33 = arith.constant 0 : index
    %104 = vector.load %arg6[%c0_31, %c0_32, %c0_33] : memref<1x4x256xf32, #tpu.memory_space<vmem>>, vector<1x4x256xf32>
    %105 = vector.shape_cast %104 : vector<1x4x256xf32> to vector<4x256xf32>
    %106 = vector.shape_cast %103 : vector<4x256xf32> to vector<1x4x256xf32>
    tpu.vector_store %arg6[%c0_31, %c0_32, %c0_33], %106 {strides = array<i32>} : memref<1x4x256xf32, #tpu.memory_space<vmem>>, vector<1x4x256xf32>,
    return
  }
  func.func @transform_0(%arg0: i32) -> i32 {
    %c0_i32 = arith.constant 0 : i32
    %c0_i32_0 = arith.constant 0 : i32
    return %c0_i32 : i32
  }
  func.func @transform_1(%arg0: i32) -> (i32, i32, i32) {
    %c0_i32 = arith.constant 0 : i32
    %c0_i32_0 = arith.constant 0 : i32
    %c0_i32_1 = arith.constant 0 : i32
    return %arg0, %c0_i32, %c0_i32_0 : i32, i32, i32
  }
  func.func @transform_2(%arg0: i32) -> (i32, i32) {
    %c0_i32 = arith.constant 0 : i32
    %c0_i32_0 = arith.constant 0 : i32
    %c0_i32_1 = arith.constant 0 : i32
    return %c0_i32, %c0_i32_0 : i32, i32
  }
  func.func @transform_3(%arg0: i32) -> (i32, i32) {
    %c0_i32 = arith.constant 0 : i32
    %c0_i32_0 = arith.constant 0 : i32
    %c0_i32_1 = arith.constant 0 : i32
    return %c0_i32, %c0_i32_0 : i32, i32
  }
  func.func @transform_4(%arg0: i32) -> (i32, i32) {
    %c0_i32 = arith.constant 0 : i32
    %c0_i32_0 = arith.constant 0 : i32
    %c0_i32_1 = arith.constant 0 : i32
    return %c0_i32, %c0_i32_0 : i32, i32
  }
  func.func @transform_5(%arg0: i32) -> (i32, i32, i32) {
    %c0_i32 = arith.constant 0 : i32
    %c0_i32_0 = arith.constant 0 : i32
    %c0_i32_1 = arith.constant 0 : i32
    return %arg0, %c0_i32, %c0_i32_0 : i32, i32, i32
  }
}

</mosaic_0001>

<bundles_post_ra>
// kernel: tpu_custom_call.1
= control target key start
LH: loop header
LB: loop body
LE: loop exit
PB: predicated region body
PF: predicated region fallthrough
CT: control target
= control target key end

     0   :  { %10 = vsyncpa [#allocation5], 0  ;;  %s1468_s0 = inlined_call_operand.hbm [shape: f32[3], index: 0, kind: input, shape index: {}]   ;;  %s1469_s1 = inlined_call_operand.hbm [shape: f32[2,4,256], index: 1, kind: input, shape index: {}]   ;;  %s1470_s2 = inlined_call_operand.hbm [shape: bf16[8,4], index: 2, kind: input, shape index: {}]   ;;  %s1471_s3 = inlined_call_operand.hbm [shape: f32[8,1], index: 3, kind: input, shape index: {}]   ;;  %s1472_s4 = inlined_call_operand.hbm [shape: f32[4,4], index: 4, kind: input, shape index: {}]   ;;  %s1473_s5 = inlined_call_operand.hbm [shape: f32[2,4,256], index: 5, kind: output, shape index: {}]  }
   0x1   :  { %11 = vsyncpa [#allocation3], 0 }
   0x2   :  { %13 = vsyncpa [#allocation3 + $0x1], 0 }
   0x3   :  { %14 = vsyncpa [#allocation8], 0 }
   0x4   :  { %15 = vsyncpa [#allocation11], 0 }
   0x5   :  { %16 = vsyncpa [#allocation4], 0 }
   0x6   :  { %18 = vsyncpa [#allocation4 + $0x1], 0  ;;  %s1143_s18 = smov 0   ;;  %s1145_s19 = smov 0  }
   0x7   :  { %s1147_s20 = smov 0   ;;  %s1149_s21 = smov 0  }
   0x8 LB: > { %s1104_s22 = smov [#allocation7]   ;;  %s1164_s24 = sadd.s32 4294967295, %s1102_s21   ;;  %s1102_s21 = sphi %s1149_s21, %s1499_s21   ;;  %s1098_s20 = sphi %s1147_s20, %s1498_s20   ;;  %s1094_s19 = sphi %s1145_s19, %s1497_s19   ;;  %s1090_s18 = sphi %s1143_s18, %s1496_s18  }
   0x9   : > { %s187_s23 = sshll.u32 %s1104_s22, 4  ;;  %p726_p0 = scmp.ge.s32.totalorder %s1102_s21, 1  ;;  %s188_s23 = int_to_ptr.vmem [resolvable:$true] %s187_s23 }
   0xa   : > { %p1474_p1 = scmp.eq.s32.totalorder %s1164_s24, 0  ;;  %p165_p2 = scmp.lt.s32.totalorder %s1102_s21, 3 }
   0xb   : > { %s1105_s26 = smov [#allocation9]   ;;  %s1106_s29 = smov [#allocation10]  }
   0xc   : > { %p1169_p3 = pnand %p726_p0, %p165_p2  ;;  %s198_s27 = sshll.u32 %s1105_s26, 4  ;;  %s1176_s27 = int_to_ptr.vmem [resolvable:$true] %s198_s27 }
   0xd   : > { %s209_s30 = sshll.u32 %s1106_s29, 4  ;;  %s897_s8 = scalar_lea.hbm %s1470_s2, 64  ;;  %s1184_s30 = int_to_ptr.vmem [resolvable:$true] %s209_s30 }
   0xe   : > { %s1477_s25 = scalar_select %p1169_p3, 1, 0 }
   0xf   : > { %p782_p5 = pneg %p1169_p3  ;;  %p898_p7 = scmp.ne.s32.totalorder %s1470_s2, %s897_s8 }
  0x10   : > { %p904_p11 = scmp.lt.u32.totalorder %s897_s8, %s1470_s2 }
  0x11   : > { %p1180_p6 = pnand %p782_p5, %p1474_p1 }
  0x13   : > { %p1194_p8 = pneg %p1180_p6 }
  0x15   : > { %p900_p9 = pnand %p1194_p8, %p898_p7 }
  0x17   : > { %p901_p10 = pneg %p900_p9 }
  0x19   : > { %p906_p12 = pnand %p904_p11, %p901_p10 }
  0x1b   : > { %909 = shalt.err (!%p906_p12)
}
  0x1c   : > { %s910_s14 = scalar_lea.vmem %s188_s23, 64  ;;  %p918_p5 = scmp.lt.s32.totalorder %s188_s23, %s188_s23 }
  0x1d   : > { %p911_p13 = scmp.ne.s32.totalorder %s188_s23, %s910_s14  ;;  %p919_p4 = scmp.lt.s32.totalorder %s910_s14, %s910_s14 }
  0x1f   : > { %p913_p0 = pnand %p911_p13, %p1194_p8  ;;  %p920_p1 = por %p919_p4, %p918_p5 }
  0x21   : > { %p914_p2 = pneg %p913_p0 }
  0x23   : > { %p921_p3 = pnand %p920_p1, %p914_p2 }
  0x25   : > { %924 = shalt.err (!%p921_p3)
}
  0x26   : > { %788 = dma.hbm_to_vmem [thread:$0]  (!%p1180_p6), %s1470_s2, 64, %s188_s23, [#allocation8]  }
  0x27   : > { %s925_s26 = scalar_lea.hbm %s1468_s0, 16 }
  0x28   : > { %p926_p7 = scmp.ne.s32.totalorder %s1468_s0, %s925_s26  ;;  %p932_p1 = scmp.lt.u32.totalorder %s925_s26, %s1468_s0 }
  0x2a   : > { %p928_p9 = pnand %p926_p7, %p1194_p8 }
  0x2c   : > { %p929_p4 = pneg %p928_p9 }
  0x2e   : > { %p934_p3 = pnand %p932_p1, %p929_p4 }
  0x30   : > { %937 = shalt.err (!%p934_p3)
}
  0x31   : > { %s1107_s9 = smov [#allocation2]   ;;  %s938_s14 = scalar_lea.hbm %s1471_s3, 128 }
  0x32   : > { %785 = dma.hbm_to_smem (!%p1180_p6), %s1468_s0, 16, %s1107_s9, [#allocation5]  }
  0x33   : > { %p939_p10 = scmp.ne.s32.totalorder %s1471_s3, %s938_s14  ;;  %p945_p13 = scmp.lt.u32.totalorder %s938_s14, %s1471_s3 }
  0x35   : > { %p941_p11 = pnand %p939_p10, %p1194_p8 }
  0x37   : > { %p942_p12 = pneg %p941_p11 }
  0x39   : > { %p947_p0 = pnand %p945_p13, %p942_p12 }
  0x3b   : > { %950 = shalt.err (!%p947_p0)
}
  0x3c   : > { %s951_s26 = scalar_lea.vmem %s1176_s27, 128  ;;  %p959_p9 = scmp.lt.s32.totalorder %s1176_s27, %s1176_s27 }
  0x3d   : > { %p952_p2 = scmp.ne.s32.totalorder %s1176_s27, %s951_s26  ;;  %p960_p4 = scmp.lt.s32.totalorder %s951_s26, %s951_s26 }
  0x3f   : > { %p954_p5 = pnand %p952_p2, %p1194_p8  ;;  %p961_p1 = por %p960_p4, %p959_p9 }
  0x41   : > { %p955_p7 = pneg %p954_p5 }
  0x43   : > { %p962_p3 = pnand %p961_p1, %p955_p7 }
  0x45   : > { %965 = shalt.err (!%p962_p3)
}
  0x46   : > { %791 = dma.hbm_to_vmem [thread:$0]  (!%p1180_p6), %s1471_s3, 128, %s1176_s27, [#allocation8]  }
  0x47   : > { %s966_s9 = scalar_lea.hbm %s1472_s4, 64 }
  0x48   : > { %p967_p10 = scmp.ne.s32.totalorder %s1472_s4, %s966_s9  ;;  %p973_p13 = scmp.lt.u32.totalorder %s966_s9, %s1472_s4 }
  0x4a   : > { %p969_p11 = pnand %p967_p10, %p1194_p8 }
  0x4c   : > { %p970_p12 = pneg %p969_p11 }
  0x4e   : > { %p975_p0 = pnand %p973_p13, %p970_p12 }
  0x50   : > { %978 = shalt.err (!%p975_p0)
}
  0x51   : > { %s979_s27 = scalar_lea.vmem %s1184_s30, 64  ;;  %p987_p9 = scmp.lt.s32.totalorder %s1184_s30, %s1184_s30 }
  0x52   : > { %p980_p2 = scmp.ne.s32.totalorder %s1184_s30, %s979_s27  ;;  %p988_p4 = scmp.lt.s32.totalorder %s979_s27, %s979_s27 }
  0x54   : > { %p982_p5 = pnand %p980_p2, %p1194_p8  ;;  %p989_p1 = por %p988_p4, %p987_p9 }
  0x56   : > { %p983_p7 = pneg %p982_p5 }
  0x58   : > { %p990_p3 = pnand %p989_p1, %p983_p7 }
  0x5a   : > { %993 = shalt.err (!%p990_p3)
}
  0x5b   : > { %794 = dma.hbm_to_vmem [thread:$0]  (!%p1180_p6), %s1472_s4, 64, %s1184_s30, [#allocation11]  }
  0x5c   : > { %s725_s28 = sadd.s32 4294967294, %s1102_s21   ;;  %s1274_s11 = sadd.s32 1, %s1102_s21  }
  0x5d   : > { %s49_s16 = ssub.s32 %s1102_s21, %s1274_s11  ;;  %s52_s17 = sadd.s32 1, %s1098_s20 }
  0x5e   : > { %p50_p8 = scmp.eq.s32.totalorder %s49_s16, 0  ;;  %p59_p10 = scmp.ne.s32.totalorder %s1098_s20, %s1094_s19 }
  0x5f   : > { %p60_p11 = scmp.eq.s32.totalorder %s1102_s21, 0  ;;  %p65_p12 = scmp.ne.s32.totalorder %s1094_s19, %s1090_s18 }
  0x60   : > { %s1285_s22 = scalar_select %p50_p8, %s1098_s20, %s52_s17  }
  0x61   : > { %p1287_p13 = por %p60_p11, %p59_p10  ;;  %p1481_p0 = scmp.eq.s32.totalorder %s1164_s24, 0 }
  0x62   : > { %p152_p2 = scmp.eq.s32.totalorder %s1164_s24, 1  ;;  %p158_p5 = scmp.eq.s32.totalorder %s725_s28, 1 }
  0x63   : > { %p1293_p6 = por %p1481_p0, %p65_p12  ;;  %p807_p7 = scmp.lt.s32.totalorder %s1102_s21, 2 }
  0x64   : > { %s220_s29 = sand.u32 1, %s1098_s20   ;;  %p1300_p9 = por %p152_p2, %p59_p10 }
  0x65   : > { %p1304_p4 = por %p158_p5, %p65_p12  ;;  %s732_s8 = sshll.u32 %s220_s29, 3 }
  0x66   : > { %s1483_s6 = scalar_select %p1300_p9, 1, 0 }
  0x67   : > { %s1484_s7 = scalar_select %p1304_p4, 1, 0 }
  0x68   : > { %s753_s9 = sshll.u32 %s1102_s21, 7  ;;  %s224_s13 = scalar_lea.vmem [#allocation6], %s732_s8 }
  0x69   : > { %s1312_s12 = scalar_lea.hbm %s1469_s1, %s753_s9  ;;  %s232_s27 = sshll.u32 %s224_s13, 4  ;;  %s1314_s27 = int_to_ptr.vmem [resolvable:$true] %s232_s27 }
  0x6a   : > { %p1318_p1 = pnand %p807_p7, %p1287_p13  ;;  %s221_s15 = scalar_lea.sflag [#allocation3], %s220_s29 }
  0x6b   : > { %s994_s28 = scalar_lea.hbm %s1312_s12, 128  ;;  %s999_s8 = scalar_lea.hbm %s1469_s1, 256 }
  0x6c   : > { %p995_p3 = scmp.ne.s32.totalorder %s1312_s12, %s994_s28  ;;  %p996_p8 = pneg %p1318_p1 }
  0x6d   : > { %p1000_p12 = scmp.lt.u32.totalorder %s1312_s12, %s1469_s1  ;;  %p1001_p13 = scmp.lt.u32.totalorder %s999_s8, %s994_s28 }
  0x6e   : > { %p997_p10 = pnand %p996_p8, %p995_p3  ;;  %p1003_p2 = scmp.lt.u32.totalorder %s994_s28, %s1312_s12 }
  0x6f   : > { %p1002_p0 = por %p1001_p13, %p1000_p12 }
  0x70   : > { %p998_p11 = pneg %p997_p10 }
  0x71   : > { %p1004_p5 = por %p1003_p2, %p1002_p0 }
  0x73   : > { %p1005_p7 = pnand %p1004_p5, %p998_p11 }
  0x75   : > { %1008 = shalt.err (!%p1005_p7)
}
  0x76   : > { %s1009_s29 = scalar_lea.vmem %s1314_s27, 128  ;;  %s1108_s23 = smov [#allocation6]  }
  0x77   : > { %p1010_p3 = scmp.ne.s32.totalorder %s1314_s27, %s1009_s29  ;;  %s1014_s10 = sshll.u32 %s1108_s23, 4  ;;  %s1015_s10 = int_to_ptr.vmem [resolvable:$false] %s1014_s10 }
  0x78   : > { %s1016_s13 = scalar_lea.vmem %s1015_s10, 256  ;;  %p1017_p9 = scmp.lt.s32.totalorder %s1314_s27, %s1015_s10 }
  0x79   : > { %p1012_p10 = pnand %p1010_p3, %p996_p8  ;;  %p1018_p12 = scmp.lt.s32.totalorder %s1016_s13, %s1009_s29 }
  0x7b   : > { %p1013_p4 = pneg %p1012_p10  ;;  %p1019_p13 = por %p1018_p12, %p1017_p9 }
  0x7d   : > { %p1020_p0 = pnand %p1019_p13, %p1013_p4 }
  0x7f   : > { %1023 = shalt.err (!%p1020_p0)
}
  0x80   : > { %798 = dma.hbm_to_vmem [thread:$0]  (!%p1318_p1), %s1312_s12, 128, %s1314_s27, %s221_s15  }
  0x81   : > { %p1486_p11 = scmp.ne.s32.totalorder %s1477_s25, 0 }
  0x82   : > { %p1487_p8 = scmp.eq.s32.totalorder (!%p1486_p11), %s1164_s24, 0 }
  0x83   : > { %241 = sbr.rel (%p1486_p11) target bundleno = 1265 (0x4f1), region = 40 }
  0x8a   : > { %1069 = dma.done.wait (%p1487_p8), [#allocation5], 16   ;;  %p1488_p2 = pmov %p1487_p8 }
  0x8b   : > { %s1354_s28 = sand.u32 1, %s1094_s19  }
  0x8c   : > { %1071 = vsyncadd (%p1488_p2), [#allocation5], 4294967280  ;;  %s737_s14 = sshll.u32 %s1354_s28, 3  ;;  %s248_s16 = scalar_lea.sflag [#allocation3], %s1354_s28 }
  0x8d   : > { %s251_s12 = scalar_lea.vmem [#allocation6], %s737_s14 }
  0x8e   : > { %1073 = dma.done.wait (%p1293_p6), %s248_s16, 128  }
  0x8f   : > { %1075 = vsyncadd (%p1293_p6), %s248_s16, 4294967168  ;;  %p1489_p9 = pmov %p1488_p2 }
  0x90   : > { %p1490_p4 = pmov %p1488_p2 }
  0x91   : > { %1077 = dma.done.wait (%p1489_p9), [#allocation8], 192  }
  0x92   : > { %1079 = vsyncadd (%p1490_p4), [#allocation8], 4294967104  ;;  %p1491_p1 = pmov %p1488_p2 }
  0x94   : > { %1081 = dma.done.wait (%p1491_p1), [#allocation11], 64   ;;  %p1492_p5 = pmov %p1491_p1 }
  0x96   : > { %1083 = vsyncadd (%p1492_p5), [#allocation11], 4294967232 }
  0x97   : > { %268 = sfence }
  0x98   : > { %v1372_v0 = vld [vmem:[%s251_s12] sm:$0xff]  ;;  %vm359_vm0 = vcmask 1041408   ;;  %v1109_v3 = vmov 0   ;;  %v349_v4 = vld [vmem:[#allocation9] sm:$0xff]  ;;  %v346_v7 = vld [vmem:[#allocation7] sm:$0xf]  ;;  %v439_v42 = vlaneseq }
  0x99   : > { %v1376_v1 = vcombine.high %v1372_v0, %v1372_v0  ;;  %v347_v2 = vpack.c.bf16 %v1372_v0, %v1372_v0  ;;  %398 = vmatprep.mubr.bf16.mxu0 %v1109_v3  ;;  %852 = vset.pattern.permute.xlu0 %v1109_v3  ;;  %vm355_vm1 = vcmask 31744   ;;  %vm419_vm2 = vcmask 1044484   ;;  %v454_v61 = vld [vmem:[#allocation10] sm:$0xf]  ;;  %s746_s25 = sld [smem:[#allocation2 + $0x1]]  ;;  %s747_s30 = sld [smem:[#allocation2 + $0x2]] }
  0x9a   : > { %352 = vperm.xlu0 %852, %v349_v4   ;;  %853 = vset.pattern.permute.xlu1 %v1109_v3  ;;  %v1110_v40 = vmov 0.0   ;;  %v440_v43 = vshrl.u32 %v439_v42, 7  ;;  %vm296_vm3 = vcmask 1043456   ;;  %vm1111_vm4 = vmmov 0   ;;  %s560_s27 = sld [smem:[#allocation2]]  ;;  %s754_s15 = sshll.u32 %s1164_s24, 7 }
  0x9b   : > { %v348_v5 = vpack.c.bf16 %v1376_v1, %v1376_v1  ;;  %v361_v6 = vsel %vm359_vm0, %v347_v2, 0  ;;  %757 = vmatprep.subr.mxu1 %v1110_v40  ;;  %v297_v54 = vsel %vm296_vm3, %v1372_v0, 0.0  ;;  %v298_v55 = vsel %vm296_vm3, %v1376_v1, 0.0  ;;  %759 = vmatprep.mubr.msk.f32.mxu1 %vm1111_vm4, %v1110_v40  ;;  %s290_s17 = scalar_lea.vmem [#allocation12], %s737_s14  ;;  %s1424_s29 = scalar_lea.hbm %s1473_s5, %s754_s15 }
  0x9c   : > { %v441_v44 = vsub.s32 4, %v440_v43  ;;  %v299_v57 = vadd.f32 %v298_v55, %v297_v54  ;;  %v322_v58 = vsel %vm296_vm3, %v1372_v0, -inf  ;;  %v323_v59 = vsel %vm296_vm3, %v1376_v1, -inf  ;;  %s614_s8 = sshll.u32 %s290_s17, 4  ;;  %s600_s23 = scalar_lea.sflag [#allocation4], %s1354_s28  ;;  %s1426_s8 = int_to_ptr.vmem [resolvable:$true] %s614_s8 }
  0x9d   : > { %742 = vmatprep.subr.msk.bf16.mxu0 %vm359_vm0, %v348_v5  ;;  %v324_v60 = vmax.f32 %v322_v58, %v323_v59  ;;  %s1024_s10 = scalar_lea.vmem %s1426_s8, 128  ;;  %p1493_p7 = scmp.ne.s32.totalorder %s1483_s6, 0 }
  0x9e   : > { %367 = vmatpush1.bf16.msra.mxu0 %v361_v6  ;;  %p1025_p6 = scmp.ne.s32.totalorder %s1426_s8, %s1024_s10  ;;  %s1112_s24 = smov [#allocation12]  }
  0x9f   : > { %s1028_s13 = sshll.u32 %s1112_s24, 4  ;;  %s1029_s13 = int_to_ptr.vmem [resolvable:$false] %s1028_s13 }
  0xa0   : > { %p1026_p3 = pnand %p1025_p6, %p1493_p7  ;;  %s1030_s14 = scalar_lea.vmem %s1029_s13, 256 }
  0xa1   : > { %743 = vmatmul.mubr.msk.bf16.vlgmr.msra.gmra.mrb[0].mxu0 %vm355_vm1, %v346_v7  ;;  %p1031_p12 = scmp.lt.s32.totalorder %s1426_s8, %s1029_s13  ;;  %p1032_p13 = scmp.lt.s32.totalorder %s1030_s14, %s1024_s10 }
  0xa2   : > { %p1027_p10 = pneg %p1026_p3 }
  0xa3   : > { %p1033_p0 = por %p1032_p13, %p1031_p12 }
  0xa5   : > { %p1034_p11 = pnand %p1033_p0, %p1027_p10 }
 0x119   : > { %v353_v8 = vpop.permute.xlu0 %352 }
 0x174   : > { %v400_v9 = vpop.f32.mrb[0].mxu0 }
 0x175   : > { %v401_v10 = vadd.f32 %v400_v9, %v353_v8  ;;  %v402_v11 = vpop.f32.mrb[1].mxu0 }
 0x176   : > { %v403_v12 = vadd.f32 %v402_v11, %v353_v8  ;;  %v404_v13 = vpop.f32.mrb[2].mxu0 }
 0x177   : > { %v407_v14 = vsub.f32 0.0, %v401_v10  ;;  %v405_v15 = vpop.f32.mrb[3].mxu0 }
 0x178   : > { %v408_v16 = vsub.f32 0.0, %v403_v12 }
 0x179   : > { %v409_v17 = vmul.f32 1.442695, %v407_v14 }
 0x17a   : > { %v411_v18 = vmul.f32 1.442695, %v408_v16 }
 0x17b   : > { %855 = vpow2.f32 %v409_v17 }
 0x17c   : > { %857 = vpow2.f32 %v411_v18 }
 0x185   : > { %v856_v19 = vpop.eup %855 }
 0x186   : > { %v858_v20 = vpop.eup %857  ;;  %v413_v21 = vadd.f32 1.0, %v856_v19 }
 0x187   : > { %v414_v22 = vadd.f32 1.0, %v858_v20 }
 0x188   : > { %859 = vrcp.f32 %v413_v21 }
 0x189   : > { %861 = vrcp.f32 %v414_v22 }
 0x192   : > { %v860_v23 = vpop.eup %859 }
 0x193   : > { %v862_v24 = vpop.eup %861  ;;  %v1383_v25 = vmul.f32 %v860_v23, %v401_v10 }
 0x194   : > { %v1385_v26 = vmul.f32 %v862_v24, %v403_v12 }
 0x195   : > { %v420_v27 = vsel %vm419_vm2, %v1383_v25, -inf }
 0x196   : > { %v421_v28 = vsel %vm419_vm2, %v1385_v26, -inf }
 0x197   : > { %v422_v29 = vmax.f32 %v420_v27, %v421_v28 }
 0x199   : > { %423 = vmax.xlane.f32.xlu0 %v422_v29 }
 0x226   : > { %v424_v30 = vpop.xlane.xlu0 %423 }
 0x227   : > { %v425_v31 = vsub.f32 %v1383_v25, %v424_v30  ;;  %v426_v32 = vsub.f32 %v1385_v26, %v424_v30 }
 0x229   : > { %v427_v33 = vmul.f32 1.442695, %v425_v31  ;;  %v429_v34 = vmul.f32 1.442695, %v426_v32 }
 0x22b   : > { %863 = vpow2.f32 %v427_v33 }
 0x22c   : > { %865 = vpow2.f32 %v429_v34 }
 0x235   : > { %v864_v35 = vpop.eup %863 }
 0x236   : > { %v866_v36 = vpop.eup %865  ;;  %v431_v37 = vsel %vm419_vm2, %v864_v35, 0.0 }
 0x237   : > { %v432_v38 = vsel %vm419_vm2, %v866_v36, 0.0 }
 0x238   : > { %v433_v39 = vadd.f32 %v432_v38, %v431_v37 }
 0x23a   : > { %434 = vadd.xlane.f32.xlu1 %v433_v39 }
 0x2c7   : > { %v435_v41 = vpop.xlane.xlu1 %434 }
 0x2c8   : > { %867 = vrcp.f32 %v435_v41 }
 0x2d2   : > { %v868_v45 = vpop.eup %867 }
 0x2d3   : > { %v437_v46 = vmul.f32 %v868_v45, %v864_v35  ;;  %v438_v47 = vmul.f32 %v868_v45, %v866_v36 }
 0x2d5   : > { %v442_v48 = vrot.slane %v437_v46, %v441_v44  ;;  %v446_v49 = vrot.slane %v438_v47, %v441_v44 }
 0x2d7   : > { %v447_v50 = vmul.f32 %v442_v48, %v1383_v25  ;;  %v448_v51 = vmul.f32 %v446_v49, %v1385_v26 }
 0x2d9   : > { %v449_v52 = vsel %vm296_vm3, %v447_v50, 0.0  ;;  %v450_v53 = vsel %vm296_vm3, %v448_v51, 0.0  ;;  %v538_v51 = vstv %s746_s25 }
 0x2da   : > { %v451_v56 = vadd.f32 %v450_v53, %v449_v52  ;;  %v541_v52 = vstv %s747_s30 }
 0x2dc   : > { %452 = vadd.xlane.f32.xlu1 %v451_v56 }
 0x2e0   : > { %300 = vadd.xlane.f32.xlu1 %v299_v57 }
 0x2e4   : > { %325 = vmax.xlane.f32.xlu1 %v324_v60 }
 0x369   : > { %v453_v62 = vpop.xlane.xlu1 %452 }
 0x36a   : > { %758 = vmatpush3.msk.msra.mxu1 %vm296_vm3, %v453_v62 }
 0x36b   : > { %760 = vmatmul.mubr.msk.f32.vlgmr.msra.gmra.mrb[0].mxu1 %vm355_vm1, %v454_v61 }
 0x36d   : > { %v301_v63 = vpop.xlane.xlu1 %300 }
 0x36e   : > { %v302_v2 = vmul.f32 0.00390625, %v301_v63 }
 0x370   : > { %v303_v4 = vsel %vm296_vm3, %v302_v2, -inf }
 0x371   : > { %v326_v3 = vpop.xlane.xlu1 %325  ;;  %v304_v6 = vrot.slane %v303_v4, 4 }
 0x372   : > { %v327_v5 = vsel %vm296_vm3, %v326_v3, -inf }
 0x373   : > { %v328_v1 = vrot.slane %v327_v5, 4  ;;  %v305_v7 = vmax.f32 %v303_v4, %v304_v6 }
 0x375   : > { %v329_v8 = vmax.f32 %v327_v5, %v328_v1  ;;  %v306_v9 = vrot.slane %v305_v7, 2 }
 0x377   : > { %v330_v10 = vrot.slane %v329_v8, 2  ;;  %v307_v11 = vmax.f32 %v305_v7, %v306_v9 }
 0x379   : > { %v331_v12 = vmax.f32 %v329_v8, %v330_v10  ;;  %v308_v13 = vrot.slane %v307_v11, 1 }
 0x37b   : > { %v332_v14 = vrot.slane %v331_v12, 1  ;;  %v309_v15 = vmax.f32 %v307_v11, %v308_v13 }
 0x37d   : > { %v333_v16 = vmax.f32 %v331_v12, %v332_v14  ;;  %v310_v17 = vsub.f32 %v302_v2, %v309_v15 }
 0x37f   : > { %v334_v18 = vsub.f32 %v326_v3, %v333_v16  ;;  %v311_v19 = vmul.f32 1.442695, %v310_v17 }
 0x381   : > { %v335_v20 = vmul.f32 1.442695, %v334_v18  ;;  %869 = vpow2.f32 %v311_v19 }
 0x383   : > { %871 = vpow2.f32 %v335_v20 }
 0x38b   : > { %v870_v21 = vpop.eup %869 }
 0x38c   : > { %v313_v23 = vsel %vm296_vm3, %v870_v21, 0.0 }
 0x38d   : > { %v872_v22 = vpop.eup %871  ;;  %v314_v27 = vrot.slane %v313_v23, 4 }
 0x38e   : > { %v337_v24 = vsel %vm296_vm3, %v872_v22, 0.0 }
 0x38f   : > { %v338_v28 = vrot.slane %v337_v24, 4  ;;  %v315_v29 = vadd.f32 %v314_v27, %v313_v23 }
 0x391   : > { %v339_v30 = vadd.f32 %v338_v28, %v337_v24  ;;  %v316_v34 = vrot.slane %v315_v29, 2 }
 0x393   : > { %v340_v36 = vrot.slane %v339_v30, 2  ;;  %v317_v37 = vadd.f32 %v316_v34, %v315_v29 }
 0x395   : > { %v341_v38 = vadd.f32 %v340_v36, %v339_v30  ;;  %v318_v39 = vrot.slane %v317_v37, 1 }
 0x397   : > { %v342_v40 = vrot.slane %v341_v38, 1  ;;  %v319_v42 = vadd.f32 %v318_v39, %v317_v37 }
 0x399   : > { %v343_v43 = vadd.f32 %v342_v40, %v341_v38 }
 0x43e   : > { %v527_v31 = vpop.f32.mrb[0].mxu1 }
 0x43f   : > { %v531_v32 = vsub.f32 0.0, %v527_v31  ;;  %v761_v33 = vpop.f32.mrb[1].mxu1 }
 0x441   : > { %v532_v35 = vmul.f32 1.442695, %v531_v32 }
 0x443   : > { %873 = vpow2.f32 %v532_v35 }
 0x44d   : > { %v874_v41 = vpop.eup %873 }
 0x44e   : > { %v534_v44 = vadd.f32 1.0, %v874_v41 }
 0x450   : > { %875 = vrcp.f32 %v534_v44 }
 0x451   : > { %877 = vrcp.f32 %v319_v42 }
 0x452   : > { %879 = vrcp.f32 %v343_v43 }
 0x45a   : > { %v876_v45 = vpop.eup %875 }
 0x45b   : > { %v878_v46 = vpop.eup %877  ;;  %v536_v47 = vmul.f32 %v876_v45, %v527_v31 }
 0x45c   : > { %v880_v48 = vpop.eup %879  ;;  %v321_v49 = vmul.f32 %v878_v46, %v870_v21 }
 0x45d   : > { %588 = vperm.xlu1 %853, %v536_v47   ;;  %v345_v50 = vmul.f32 %v880_v48, %v872_v22 }
 0x45e   : > { %v539_v53 = vmul.f32 %v538_v51, %v321_v49 }
 0x45f   : > { %v542_v54 = vmul.f32 %v541_v52, %v345_v50 }
 0x461   : > { %v543_v55 = vadd.f32 %v542_v54, %v539_v53 }
 0x463   : > { %v544_v56 = vmul.f32 %v543_v55, %v1383_v25  ;;  %v545_v57 = vmul.f32 %v543_v55, %v1385_v26  ;;  %v561_v25 = vstv %s560_s27 }
 0x465   : > { %v546_v58 = vsel %vm296_vm3, %v544_v56, 0.0  ;;  %v553_v59 = vsel %vm296_vm3, %v545_v57, 0.0 }
 0x466   : > { %v547_v60 = vrot.slane %v546_v58, 4  ;;  %v554_v61 = vrot.slane %v553_v59, 4 }
 0x468   : > { %v548_v62 = vadd.f32 %v547_v60, %v546_v58  ;;  %v555_v63 = vadd.f32 %v554_v61, %v553_v59 }
 0x46a   : > { %v549_v2 = vrot.slane %v548_v62, 2  ;;  %v556_v3 = vrot.slane %v555_v63, 2 }
 0x46c   : > { %v550_v4 = vadd.f32 %v549_v2, %v548_v62  ;;  %v557_v5 = vadd.f32 %v556_v3, %v555_v63 }
 0x46e   : > { %v551_v6 = vrot.slane %v550_v4, 1  ;;  %v558_v1 = vrot.slane %v557_v5, 1 }
 0x470   : > { %v552_v7 = vadd.f32 %v551_v6, %v550_v4  ;;  %v559_v8 = vadd.f32 %v558_v1, %v557_v5 }
 0x472   : > { %v562_v9 = vadd.f32 %v561_v25, %v552_v7  ;;  %v563_v26 = vadd.f32 %v561_v25, %v559_v8 }
 0x474   : > { %v564_v10 = vsub.f32 0.0, %v562_v9  ;;  %v565_v11 = vsub.f32 0.0, %v563_v26 }
 0x476   : > { %v566_v12 = vmul.f32 1.442695, %v564_v10  ;;  %v568_v13 = vmul.f32 1.442695, %v565_v11 }
 0x478   : > { %881 = vpow2.f32 %v566_v12 }
 0x479   : > { %883 = vpow2.f32 %v568_v13 }
 0x482   : > { %v882_v14 = vpop.eup %881 }
 0x483   : > { %v884_v15 = vpop.eup %883  ;;  %v570_v16 = vadd.f32 1.0, %v882_v14 }
 0x484   : > { %v571_v17 = vadd.f32 1.0, %v884_v15 }
 0x485   : > { %885 = vrcp.f32 %v570_v16 }
 0x486   : > { %887 = vrcp.f32 %v571_v17 }
 0x48f   : > { %v886_v18 = vpop.eup %885 }
 0x490   : > { %v888_v19 = vpop.eup %887  ;;  %v574_v20 = vmul.f32 %v886_v18, %v562_v9 }
 0x491   : > { %v575_v21 = vmul.f32 %v888_v19, %v563_v26 }
 0x492   : > { %v576_v22 = vsub.f32 0.0, %v574_v20 }
 0x493   : > { %v577_v23 = vsub.f32 0.0, %v575_v21 }
 0x494   : > { %v578_v24 = vmul.f32 1.442695, %v576_v22 }
 0x495   : > { %v580_v27 = vmul.f32 1.442695, %v577_v23 }
 0x496   : > { %889 = vpow2.f32 %v578_v24 }
 0x497   : > { %891 = vpow2.f32 %v580_v27 }
 0x4a0   : > { %v890_v28 = vpop.eup %889 }
 0x4a1   : > { %v892_v29 = vpop.eup %891  ;;  %v582_v30 = vadd.f32 1.0, %v890_v28 }
 0x4a2   : > { %v583_v31 = vadd.f32 1.0, %v892_v29 }
 0x4a3   : > { %893 = vrcp.f32 %v582_v30 }
 0x4a4   : > { %895 = vrcp.f32 %v583_v31 }
 0x4ad   : > { %v894_v32 = vpop.eup %893 }
 0x4ae   : > { %v896_v33 = vpop.eup %895 }
 0x4dc   : > { %v589_v34 = vpop.permute.xlu1 %588 }
 0x4dd   : > { %v591_v35 = vmul.f32 %v894_v32, %v589_v34  ;;  %v592_v36 = vmul.f32 %v896_v33, %v589_v34 }
 0x4df   : > { %v595_v37 = vcombine.low %v591_v35, %v592_v36 }
 0x4e1   : > { %v597_v38 = vadd.f32 %v595_v37, %v1372_v0 }
 0x4e3   : > { %598 = vst [vmem:[%s290_s17] sm:$0xff] %v597_v38 }
 0x4e4   : > { %1037 = shalt.err (!%p1034_p11)
}
 0x4e5   : > { %s1038_s28 = scalar_lea.hbm %s1424_s29, 128  ;;  %s1042_s25 = scalar_lea.hbm %s1473_s5, 256 }
 0x4e6   : > { %p1039_p8 = scmp.ne.s32.totalorder %s1424_s29, %s1038_s28  ;;  %p1043_p4 = scmp.lt.u32.totalorder %s1424_s29, %s1473_s5 }
 0x4e7   : > { %p1044_p1 = scmp.lt.u32.totalorder %s1042_s25, %s1038_s28  ;;  %p1046_p6 = scmp.lt.u32.totalorder %s1038_s28, %s1424_s29 }
 0x4e8   : > { %p1040_p2 = pnand %p1039_p8, %p1493_p7 }
 0x4e9   : > { %p1045_p5 = por %p1044_p1, %p1043_p4 }
 0x4ea   : > { %p1041_p9 = pneg %p1040_p2 }
 0x4eb   : > { %p1047_p3 = por %p1046_p6, %p1045_p5 }
 0x4ed   : > { %p1048_p10 = pnand %p1047_p3, %p1041_p9 }
 0x4ef   : > { %1051 = shalt.err (!%p1048_p10)
}
 0x4f0   : > { %780 = dma.vmem_to_hbm [thread:$0]  (%p1493_p7), %s1426_s8, 128, %s1424_s29, %s600_s23  }
 0x4f1 PF: > { %s626_s15 = sand.u32 1, %s1090_s18   ;;  %p1494_p12 = scmp.ne.s32.totalorder %s1484_s7, 0 }
 0x4f2   : > { %p1495_p13 = scmp.ge.s32.totalorder %s1102_s21, 2  ;;  %s627_s17 = scalar_lea.sflag [#allocation4], %s626_s15 }
 0x4f4   : > { %p800_p0 = pnand %p1495_p13, %p1494_p12 }
 0x4f6   : > { %1085 = dma.done.wait (!%p800_p0), %s627_s17, 128  }
 0x4f7   : > { %1087 = vsyncadd (!%p800_p0), %s627_s17, 4294967168  ;;  %p21_p11 = scmp.ge.s32.totalorder %s1274_s11, 4   ;;  %s1496_s18 = smov %s1094_s19 }
 0x4f8   : > { %s1497_s19 = smov %s1098_s20  ;;  %s1498_s20 = smov %s1285_s22 }
 0x4f9   : > { %s1499_s21 = smov %s1274_s11  ;;  %23 = sbr.rel (!%p21_p11) target bundleno = 8 (0x8), region = 102 }
 0x500   :  { %632 = vsyncpa [#allocation3], 1 }
 0x501   :  { %634 = vsyncpa [#allocation3 + $0x1], 1 }
 0x502   :  { %635 = vsyncpa [#allocation8], 1 }
 0x503   :  { %636 = vsyncpa [#allocation11], 1 }
 0x504   :  { %637 = vsyncpa [#allocation4], 1 }
 0x505   :  { %639 = vsyncpa [#allocation4 + $0x1], 1 }
 0x506   :  { %640 = vsyncpa [#allocation5], 1 }
 0x507   :  { %642 = vsyncpa [#allocation5 + $0x1], 1 }

</bundles_post_ra>
